<compile_context>
chip_gen: v7x
topology: tpu7x:2x2x1
jax: 0.10.0
libtpu: 0.0.40
codegen_flags: <defaults>
</compile_context>

<pallas_src>
import jax
import jax.numpy as jnp
from jax.experimental import pallas as pl
from jax.experimental.pallas import tpu as pltpu

LANE = 128          # lane width: pad feature dims to a multiple of this
MAX_TB = 512        # batch tile (rows per grid step); well under v7x VMEM budget


def _round_up(n: int, m: int) -> int:
    return ((n + m - 1) // m) * m


def _fused_linear_kernel(x_ref, y_ref, w_ref, b_ref, out_ref):
    # Residual-style add + single collapsed (matmul + bias), all in VMEM.
    h = x_ref[...] + y_ref[...]
    out_ref[...] = (
        jnp.dot(h, w_ref[...], preferred_element_type=jnp.float32) + b_ref[...]
    ).astype(out_ref.dtype)


def normal_model_forward(x, y, params):
    """Runs the fused Pallas kernel. Returns {'x': out, 'y': y} like the torch module."""
    (w1, b1), (w2, b2), (w3, b3) = params

    # Collapse the three affine layers into one (no nonlinearity between them).
    w = w1 @ w2 @ w3                        # (in_f, out_f)
    b = b1 @ w2 @ w3 + b2 @ w3 + b3         # (1, out_f)

    B, in_f = x.shape
    out_f = w.shape[1]

    # Lane-dense padding (zero-pad features to 128) and batch padding/tiling.
    in_p = _round_up(in_f, LANE)
    out_p = _round_up(out_f, LANE)
    b8 = _round_up(B, 8)                    # sublane multiple
    tb = min(MAX_TB, b8)                    # batch tile
    b_pad = _round_up(b8, tb)

    xp = jnp.zeros((b_pad, in_p), x.dtype).at[:B, :in_f].set(x)
    yp = jnp.zeros((b_pad, in_p), y.dtype).at[:B, :in_f].set(y)
    wp = jnp.zeros((in_p, out_p), w.dtype).at[:in_f, :out_f].set(w)
    bp = jnp.zeros((1, out_p), b.dtype).at[:, :out_f].set(b)

    grid = (b_pad // tb,)

    out_padded = pl.pallas_call(
        _fused_linear_kernel,
        out_shape=jax.ShapeDtypeStruct((b_pad, out_p), x.dtype),
        grid=grid,
        in_specs=[
            pl.BlockSpec((tb, in_p), lambda i: (i, 0)),      # x tile (streamed)
            pl.BlockSpec((tb, in_p), lambda i: (i, 0)),      # y tile (streamed)
            pl.BlockSpec((in_p, out_p), lambda i: (0, 0)),   # W (resident)
            pl.BlockSpec((1, out_p), lambda i: (0, 0)),      # b (resident)
        ],
        out_specs=pl.BlockSpec((tb, out_p), lambda i: (i, 0)),
        compiler_params=pltpu.CompilerParams(
            dimension_semantics=("parallel",),               # split over TCs on v7x
        ),
    )(xp, yp, wp, bp)

    out = out_padded[:B, :out_f]
    return {"x": out, "y": y}


def init_linear_params(key, in_features, out_features, dtype=jnp.float32):
    """Deterministic init matching nn.Linear's default (uniform +/- 1/sqrt(fan_in)).
    Weight is returned transposed to (in_features, out_features) for the kernel."""
    k_w, k_b = jax.random.split(key)
    bound = 1.0 / (in_features ** 0.5)
    w = jax.random.uniform(k_w, (in_features, out_features), dtype, -bound, bound)
    b = jax.random.uniform(k_b, (1, out_features), dtype, -bound, bound)
    return w, b


if __name__ == "__main__":
    key = jax.random.PRNGKey(0)
    k_x, k_y, k_l1, k_l2, k_l3 = jax.random.split(key, 5)

    batch = 8
    x = jax.random.normal(k_x, (batch, 10), jnp.float32)
    y = jax.random.normal(k_y, (batch, 10), jnp.float32)

    params = (
        init_linear_params(k_l1, 10, 20),
        init_linear_params(k_l2, 20, 30),
        init_linear_params(k_l3, 30, 40),
    )

    out = normal_model_forward(x, y, params)
    jax.block_until_ready(out)

    # Pure-JAX reference (un-collapsed three-stage computation).
    (w1, b1), (w2, b2), (w3, b3) = params
    h = x + y
    h = h @ w1 + b1
    h = h @ w2 + b2
    ref = h @ w3 + b3

    assert out["x"].shape == (batch, 40)
    assert out["y"].shape == (batch, 10)
    assert jnp.allclose(out["x"], ref, atol=1e-4, rtol=1e-4)
    assert jnp.array_equal(out["y"], y)

    print("KERNEL_OK")
</pallas_src>

<mosaic_0001>
module attributes {stable_mosaic.version = 11 : i64} {
  func.func @_fused_linear_kernel(%arg0: i32, %arg1: memref<8x128xf32, #tpu.memory_space<vmem>>, %arg2: memref<8x128xf32, #tpu.memory_space<vmem>>, %arg3: memref<128x128xf32, #tpu.memory_space<vmem>>, %arg4: memref<1x128xf32, #tpu.memory_space<vmem>>, %arg5: memref<8x128xf32, #tpu.memory_space<vmem>>) attributes {dimension_semantics = [#tpu.dimension_semantics<parallel>], iteration_bounds = array<i64: 1>, scalar_prefetch = 0 : i64, scratch_operands = 0 : i64, tpu.core_type = #tpu.core_type<tc>, window_params = [{transform_indices = @transform_0, window_bounds = array<i64: 8, 128>}, {transform_indices = @transform_1, window_bounds = array<i64: 8, 128>}, {pipeline_mode = #tpu.pipeline_mode<synchronous>, transform_indices = @transform_2, window_bounds = array<i64: 128, 128>}, {pipeline_mode = #tpu.pipeline_mode<synchronous>, transform_indices = @transform_3, window_bounds = array<i64: 1, 128>}, {transform_indices = @transform_4, window_bounds = array<i64: 8, 128>}]} {
    %c0 = arith.constant 0 : index
    %c0_0 = arith.constant 0 : index
    %0 = vector.load %arg1[%c0, %c0_0] : memref<8x128xf32, #tpu.memory_space<vmem>>, vector<8x128xf32>
    %c0_1 = arith.constant 0 : index
    %c0_2 = arith.constant 0 : index
    %1 = vector.load %arg2[%c0_1, %c0_2] : memref<8x128xf32, #tpu.memory_space<vmem>>, vector<8x128xf32>
    %2 = arith.addf %0, %1 : vector<8x128xf32>
    %c0_3 = arith.constant 0 : index
    %c0_4 = arith.constant 0 : index
    %3 = vector.load %arg3[%c0_3, %c0_4] : memref<128x128xf32, #tpu.memory_space<vmem>>, vector<128x128xf32>
    %cst = arith.constant dense<0.000000e+00> : vector<8x128xf32>
    %4 = tpu.matmul %2, %3, %cst {dimension_numbers = #tpu.dot_dimension_numbers<[1], [0], [0], [1], [0, 0, 1, 1], [], []>} : vector<8x128xf32>, vector<128x128xf32>, vector<8x128xf32> -> vector<8x128xf32>
    %c0_5 = arith.constant 0 : index
    %c0_6 = arith.constant 0 : index
    %5 = vector.load %arg4[%c0_5, %c0_6] : memref<1x128xf32, #tpu.memory_space<vmem>>, vector<1x128xf32>
    %6 = vector.broadcast %5 : vector<1x128xf32> to vector<8x128xf32>
    %7 = arith.addf %4, %6 : vector<8x128xf32>
    %c0_7 = arith.constant 0 : index
    %c0_8 = arith.constant 0 : index
    %8 = vector.load %arg5[%c0_7, %c0_8] : memref<8x128xf32, #tpu.memory_space<vmem>>, vector<8x128xf32>
    tpu.vector_store %arg5[%c0_7, %c0_8], %7 {strides = array<i32>} : memref<8x128xf32, #tpu.memory_space<vmem>>, vector<8x128xf32>,
    return
  }
  func.func @transform_0(%arg0: i32) -> (i32, i32) {
    %c0_i32 = arith.constant 0 : i32
    %c0_i32_0 = arith.constant 0 : i32
    return %arg0, %c0_i32 : i32, i32
  }
  func.func @transform_1(%arg0: i32) -> (i32, i32) {
    %c0_i32 = arith.constant 0 : i32
    %c0_i32_0 = arith.constant 0 : i32
    return %arg0, %c0_i32 : i32, i32
  }
  func.func @transform_2(%arg0: i32) -> (i32, i32) {
    %c0_i32 = arith.constant 0 : i32
    %c0_i32_0 = arith.constant 0 : i32
    %c0_i32_1 = arith.constant 0 : i32
    return %c0_i32, %c0_i32_0 : i32, i32
  }
  func.func @transform_3(%arg0: i32) -> (i32, i32) {
    %c0_i32 = arith.constant 0 : i32
    %c0_i32_0 = arith.constant 0 : i32
    %c0_i32_1 = arith.constant 0 : i32
    return %c0_i32, %c0_i32_0 : i32, i32
  }
  func.func @transform_4(%arg0: i32) -> (i32, i32) {
    %c0_i32 = arith.constant 0 : i32
    %c0_i32_0 = arith.constant 0 : i32
    return %arg0, %c0_i32 : i32, i32
  }
}

</mosaic_0001>

<bundles_post_ra>
// kernel: tpu_custom_call.1
= control target key start
LH: loop header
LB: loop body
LE: loop exit
PB: predicated region body
PF: predicated region fallthrough
CT: control target
= control target key end

     0   :  { %9 = vsyncpa [#allocation3], 0  ;;  %s433_s0 = inlined_call_operand.hbm [shape: f32[8,128], index: 0, kind: input, shape index: {}]   ;;  %s434_s1 = inlined_call_operand.hbm [shape: f32[8,128], index: 1, kind: input, shape index: {}]   ;;  %s435_s2 = inlined_call_operand.hbm [shape: f32[128,128], index: 2, kind: input, shape index: {}]   ;;  %s436_s3 = inlined_call_operand.vmem [shape: f32[1,128], index: 3, kind: input, shape index: {}]   ;;  %s437_s4 = inlined_call_operand.hbm [shape: f32[8,128], index: 4, kind: output, shape index: {}]  }
   0x1   :  { %10 = vsyncpa [#allocation6], 0 }
   0x2   :  { %11 = vsyncpa [#allocation4], 0  ;;  %s348_s15 = smov [#allocation5]   ;;  %s349_s17 = smov [#allocation2]  }
   0x3   :  { %s28_s16 = sshll.u32 %s348_s15, 4  ;;  %s18_s18 = sshll.u32 %s349_s17, 4  ;;  %s29_s16 = int_to_ptr.vmem [resolvable:$true] %s28_s16  ;;  %s19_s18 = int_to_ptr.vmem [resolvable:$true] %s18_s18 }
   0x4   :  { %s254_s21 = scalar_lea.hbm %s434_s1, 128 }
   0x5   :  { %p255_p0 = scmp.ne.s32.totalorder %s434_s1, %s254_s21  ;;  %p258_p1 = scmp.lt.u32.totalorder %s254_s21, %s434_s1 }
   0x7   :  { %p260_p2 = pnand %p258_p1, %p255_p0 }
   0x9   :  { %263 = shalt.err (!%p260_p2)
}
   0xa   :  { %s264_s26 = scalar_lea.vmem %s29_s16, 128  ;;  %p269_p4 = scmp.lt.s32.totalorder %s29_s16, %s29_s16 }
   0xb   :  { %p265_p3 = scmp.ne.s32.totalorder %s29_s16, %s264_s26  ;;  %p270_p5 = scmp.lt.s32.totalorder %s264_s26, %s264_s26 }
   0xd   :  { %p271_p6 = por %p270_p5, %p269_p4 }
   0xf   :  { %p272_p7 = pnand %p271_p6, %p265_p3 }
  0x11   :  { %275 = shalt.err (!%p272_p7)
}
  0x12   :  { %31 = dma.hbm_to_vmem [thread:$0]  %s434_s1, 128, %s29_s16, [#allocation6]  }
  0x13   :  { %s276_s5 = scalar_lea.hbm %s433_s0, 128 }
  0x14   :  { %p277_p8 = scmp.ne.s32.totalorder %s433_s0, %s276_s5  ;;  %p280_p9 = scmp.lt.u32.totalorder %s276_s5, %s433_s0 }
  0x16   :  { %p282_p10 = pnand %p280_p9, %p277_p8 }
  0x18   :  { %285 = shalt.err (!%p282_p10)
}
  0x19   :  { %s286_s10 = scalar_lea.vmem %s19_s18, 128  ;;  %p291_p12 = scmp.lt.s32.totalorder %s19_s18, %s19_s18 }
  0x1a   :  { %p287_p11 = scmp.ne.s32.totalorder %s19_s18, %s286_s10  ;;  %p292_p13 = scmp.lt.s32.totalorder %s286_s10, %s286_s10 }
  0x1c   :  { %p293_p0 = por %p292_p13, %p291_p12 }
  0x1e   :  { %p294_p1 = pnand %p293_p0, %p287_p11 }
  0x20   :  { %297 = shalt.err (!%p294_p1)
}
  0x21   :  { %21 = dma.hbm_to_vmem [thread:$0]  %s433_s0, 128, %s19_s18, [#allocation3]  }
  0x22   :  { %s350_s12 = smov [#allocation7]   ;;  %s298_s16 = scalar_lea.hbm %s435_s2, 2048 }
  0x23   :  { %s37_s13 = sshll.u32 %s350_s12, 4  ;;  %p299_p2 = scmp.ne.s32.totalorder %s435_s2, %s298_s16  ;;  %s38_s13 = int_to_ptr.vmem [resolvable:$true] %s37_s13 }
  0x24   :  { %p302_p3 = scmp.lt.u32.totalorder %s298_s16, %s435_s2 }
  0x26   :  { %p304_p4 = pnand %p302_p3, %p299_p2 }
  0x28   :  { %307 = shalt.err (!%p304_p4)
}
  0x29   :  { %s308_s22 = scalar_lea.vmem %s38_s13, 2048  ;;  %p313_p6 = scmp.lt.s32.totalorder %s38_s13, %s38_s13 }
  0x2a   :  { %p309_p5 = scmp.ne.s32.totalorder %s38_s13, %s308_s22  ;;  %p314_p7 = scmp.lt.s32.totalorder %s308_s22, %s308_s22 }
  0x2c   :  { %p315_p8 = por %p314_p7, %p313_p6 }
  0x2e   :  { %p316_p9 = pnand %p315_p8, %p309_p5 }
  0x30   :  { %319 = shalt.err (!%p316_p9)
}
  0x31   :  { %s351_s0 = smov 128   ;;  %s352_s18 = smov 8  }
  0x32   :  { %43 = dma.hbm_to_vmem [thread:$0]  %s435_s2, 2048, %s38_s13, [#allocation6], %s351_s0, %s351_s0, %s352_s18  }
  0x33   :  { %342 = dma.done.wait [#allocation3], 128  }
  0x34   :  { %343 = vsyncadd [#allocation3], 4294967168 }
  0x35   :  { %344 = dma.done.wait [#allocation6], 2176  }
  0x36   :  { %345 = vsyncadd [#allocation6], 4294965120  ;;  %v353_v0 = vmov 0.0|0.0   ;;  %vm354_vm0 = vmmov 0   ;;  %v355_v1 = vmov 0.0   ;;  %v58_v2 = vld [vmem:[#allocation7] sm:$0xff] }
  0x37   :  { %221 = vmatprep.subr.bf16.mxu0 %v353_v0  ;;  %218 = vmatprep.mubr.msk.f32.mxu0 %vm354_vm0, %v355_v1  ;;  %v59_v3 = vld [vmem:[#allocation7 + $0x8] sm:$0xff]  ;;  %v60_v4 = vld [vmem:[#allocation7 + $0x10] sm:$0xff]  ;;  %v61_v6 = vld [vmem:[#allocation7 + $0x18] sm:$0xff]  ;;  %s356_s26 = smov [#allocation8]  }
  0x38   :  { %v222_v5 = vpack.c.bf16 %v59_v3, %v58_v2  ;;  %v225_v7 = vpack.c.bf16 %v61_v6, %v60_v4  ;;  %v62_v8 = vld [vmem:[#allocation7 + $0x20] sm:$0xff]  ;;  %v63_v9 = vld [vmem:[#allocation7 + $0x28] sm:$0xff]  ;;  %v64_v11 = vld [vmem:[#allocation7 + $0x30] sm:$0xff]  ;;  %s158_s27 = sshll.u32 %s356_s26, 4  ;;  %s159_s27 = int_to_ptr.vmem [resolvable:$true] %s158_s27 }
  0x39   :  { %v228_v10 = vpack.c.bf16 %v63_v9, %v62_v8  ;;  %v65_v12 = vld [vmem:[#allocation7 + $0x38] sm:$0xff]  ;;  %v66_v14 = vld [vmem:[#allocation7 + $0x40] sm:$0xff]  ;;  %v67_v15 = vld [vmem:[#allocation7 + $0x48] sm:$0xff]  ;;  %s320_s28 = scalar_lea.vmem %s159_s27, 128  ;;  %p325_p11 = scmp.lt.s32.totalorder %s159_s27, %s159_s27 }
  0x3a   :  { %223 = vmatpush3.bf16.msra.mxu0 %v222_v5  ;;  %v231_v13 = vpack.c.bf16 %v65_v12, %v64_v11  ;;  %v234_v16 = vpack.c.bf16 %v67_v15, %v66_v14  ;;  %v68_v17 = vld [vmem:[#allocation7 + $0x50] sm:$0xff]  ;;  %v69_v18 = vld [vmem:[#allocation7 + $0x58] sm:$0xff]  ;;  %v70_v20 = vld [vmem:[#allocation7 + $0x60] sm:$0xff]  ;;  %p321_p10 = scmp.ne.s32.totalorder %s159_s27, %s320_s28  ;;  %p326_p12 = scmp.lt.s32.totalorder %s320_s28, %s320_s28 }
  0x3b   :  { %224 = vmatprep.subr.bf16.mxu0 %v353_v0  ;;  %v237_v19 = vpack.c.bf16 %v69_v18, %v68_v17  ;;  %v71_v21 = vld [vmem:[#allocation7 + $0x68] sm:$0xff]  ;;  %v72_v23 = vld [vmem:[#allocation7 + $0x70] sm:$0xff]  ;;  %v73_v24 = vld [vmem:[#allocation7 + $0x78] sm:$0xff] }
  0x3c   :  { %v240_v22 = vpack.c.bf16 %v71_v21, %v70_v20  ;;  %v243_v25 = vpack.c.bf16 %v73_v24, %v72_v23  ;;  %v55_v26 = vld [vmem:[#allocation2] sm:$0xff]  ;;  %v56_v27 = vld [vmem:[#allocation5] sm:$0xff]  ;;  %p327_p13 = por %p326_p12, %p325_p11 }
  0x3d   :  { %v57_v28 = vadd.f32 %v56_v27, %v55_v26  ;;  %v168_v29 = vld [vmem:[%s436_s3] ss:$0 sm:$0xff] }
  0x3e   :  { %226 = vmatpush3.bf16.msra.mxu0 %v225_v7  ;;  %p328_p0 = pnand %p327_p13, %p321_p10 }
  0x3f   :  { %227 = vmatprep.subr.bf16.mxu0 %v353_v0 }
  0x42   :  { %229 = vmatpush3.bf16.msra.mxu0 %v228_v10 }
  0x43   :  { %230 = vmatprep.subr.bf16.mxu0 %v353_v0 }
  0x46   :  { %232 = vmatpush3.bf16.msra.mxu0 %v231_v13 }
  0x47   :  { %233 = vmatprep.subr.bf16.mxu0 %v353_v0 }
  0x4a   :  { %235 = vmatpush3.bf16.msra.mxu0 %v234_v16 }
  0x4b   :  { %236 = vmatprep.subr.bf16.mxu0 %v353_v0 }
  0x4e   :  { %238 = vmatpush3.bf16.msra.mxu0 %v237_v19 }
  0x4f   :  { %239 = vmatprep.subr.bf16.mxu0 %v353_v0 }
  0x52   :  { %241 = vmatpush3.bf16.msra.mxu0 %v240_v22 }
  0x53   :  { %242 = vmatprep.subr.bf16.mxu0 %v353_v0 }
  0x56   :  { %244 = vmatpush3.bf16.msra.mxu0 %v243_v25 }
  0x59   :  { %219 = vmatmul.mubr.f32.vlgmr.msra.gmra.mrb[0].mxu0 %v57_v28 }
 0x12c   :  { %v147_v30 = vpop.f32.mrb[0].mxu0 }
 0x12d   :  { %v148_v31 = vadd.f32 %v168_v29, %v147_v30  ;;  %v220_v32 = vpop.f32.mrb[1].mxu0 }
 0x12f   :  { %151 = vst [vmem:[#allocation8] sm:$0xff] %v148_v31 }
 0x130   :  { %331 = shalt.err (!%p328_p0)
}
 0x131   :  { %s332_s5 = scalar_lea.hbm %s437_s4, 128 }
 0x132   :  { %p333_p1 = scmp.ne.s32.totalorder %s437_s4, %s332_s5  ;;  %p336_p2 = scmp.lt.u32.totalorder %s332_s5, %s437_s4 }
 0x134   :  { %p338_p3 = pnand %p336_p2, %p333_p1 }
 0x136   :  { %341 = shalt.err (!%p338_p3)
}
 0x137   :  { %161 = dma.vmem_to_hbm [thread:$0]  %s159_s27, 128, %s437_s4, [#allocation4]  }
 0x138   :  { %346 = dma.done.wait [#allocation4], 128  }
 0x139   :  { %347 = vsyncadd [#allocation4], 4294967168 }
 0x13a   :  { %165 = vsyncpa [#allocation3], 1 }
 0x13b   :  { %166 = vsyncpa [#allocation6], 1 }
 0x13c   :  { %167 = vsyncpa [#allocation4], 1 }

</bundles_post_ra>
